<compile_context>
chip_gen: v5e
topology: v5e:2x2
jax: 0.10.0
libtpu: 0.0.40
codegen_flags: <defaults>
</compile_context>

<pallas_src>
import math

import jax
import jax.numpy as jnp
from jax.experimental import pallas as pl
from jax.experimental.pallas import tpu as pltpu


# --------------------------------- kernels -----------------------------------

def _proj_kernel_single_k(x_ref, w_ref, b_ref, out_ref):
    # Whole contraction in one grid step: no accumulator scratch needed.
    acc = jnp.dot(x_ref[...], w_ref[...], preferred_element_type=jnp.float32)
    out_ref[...] = (acc + b_ref[...].astype(jnp.float32)).astype(out_ref.dtype)


def _proj_kernel_multi_k(x_ref, w_ref, b_ref, out_ref, acc_ref):
    # x_ref: (tm, tk), w_ref: (tk, tn) [already (d_model, vocab) layout],
    # b_ref: (1, tn), out_ref: (tm, tn), acc_ref: (tm, tn) f32 scratch.
    k = pl.program_id(2)

    @pl.when(k == 0)
    def _():
        acc_ref[...] = jnp.zeros_like(acc_ref)

    acc_ref[...] += jnp.dot(x_ref[...], w_ref[...],
                            preferred_element_type=jnp.float32)

    @pl.when(k == pl.num_programs(2) - 1)
    def _():
        out_ref[...] = (acc_ref[...] + b_ref[...].astype(jnp.float32)).astype(
            out_ref.dtype)


# ------------------------------ tile selection --------------------------------

def _round_up(x, m):
    return ((x + m - 1) // m) * m


def _pick_tiles(M, V, D, x_isz, w_isz, out_isz, budget,
                pref_tm=512, pref_tn=1024):
    """Pick (tm, tn, tk).  tk == D means single-K fast path."""
    tm = min(pref_tm, _round_up(M, 8))
    tn = min(pref_tn, _round_up(V, 128))
    tk = D  # full contraction preferred

    def vmem_need(tm, tn, tk):
        return (2 * tm * tk * x_isz          # x tiles, double-buffered
                + 2 * tk * tn * w_isz        # weight tiles, double-buffered
                + 2 * tm * tn * out_isz      # output tiles, double-buffered
                + 2 * tn * 4                 # bias tile
                + (tm * tn * 4 if tk < D else 0))   # f32 accumulator scratch

    # Shrink to fit the budget: vocab tile first, then M tile, then split K.
    while vmem_need(tm, tn, tk) > budget:
        if tn >= 256 and tn >= tm:
            tn = max(128, _round_up(tn // 2, 128))
        elif tm >= 16:
            tm = max(8, _round_up(tm // 2, 8))
        elif tk > 128:
            tk = max(128, _round_up(tk // 2, 128))
        else:
            break
    return tm, tn, tk


# -------------------------------- wrapper -------------------------------------

def projection_layer(x, weight, bias, *, compute_dtype=None):
    """out = x @ weight.T + bias   (nn.Linear forward).

    x:      (..., d_model)
    weight: (vocab_size, d_model)   -- PyTorch nn.Linear weight layout
    bias:   (vocab_size,)
    compute_dtype: optional dtype (e.g. jnp.bfloat16) for the MXU operands;
        accumulation is always f32 and the output keeps x's original dtype.
    """
    *lead, D = x.shape
    V, D_w = weight.shape
    assert D == D_w, "d_model mismatch between x and weight"
    M = math.prod(lead) if lead else 1

    out_dtype = x.dtype
    if compute_dtype is not None:
        x = x.astype(compute_dtype)
        weight = weight.astype(compute_dtype)

    x_isz = jnp.dtype(x.dtype).itemsize
    w_isz = jnp.dtype(weight.dtype).itemsize
    out_isz = jnp.dtype(out_dtype).itemsize

    # Per-chip VMEM budget (v5e/v6e: 128 MiB, v7x: 64 MiB per TensorCore).
    try:
        phys_vmem = int(pltpu.get_tpu_info().vmem_capacity_bytes)
    except Exception:
        phys_vmem = 64 * 1024 * 1024  # conservative fallback (v7x-sized)
    tile_budget = int(phys_vmem * 0.70)
    vmem_limit = int(phys_vmem * 0.85)

    tm, tn, tk = _pick_tiles(M, V, D, x_isz, w_isz, out_isz, tile_budget)

    # v7x has 2 TensorCores: ensure at least one "parallel" axis has >= 2 blocks
    # (decode-style shapes where M is tiny would otherwise idle a core).
    if pl.cdiv(M, tm) == 1 and pl.cdiv(V, tn) == 1 and tn >= 256:
        tn = max(128, _round_up(tn // 2, 128))

    M_pad = _round_up(M, tm)
    V_pad = _round_up(V, tn)
    D_pad = _round_up(D, tk) if tk < D else D

    # Pre-transpose the weight ONCE to (d_model, vocab): the kernel then does a
    # plain NN contraction (no per-tile transpose on the XLU).
    x2 = x.reshape(M, D)
    w_t = weight.T                      # (D, V)
    b2 = bias.reshape(1, V)

    if (M_pad, D_pad) != (M, D):
        x2 = jnp.pad(x2, ((0, M_pad - M), (0, D_pad - D)))
    if (D_pad, V_pad) != (D, V):
        w_t = jnp.pad(w_t, ((0, D_pad - D), (0, V_pad - V)))
    if V_pad != V:
        b2 = jnp.pad(b2, ((0, 0), (0, V_pad - V)))

    grid_m, grid_n, grid_k = M_pad // tm, V_pad // tn, D_pad // tk

    cost = pl.CostEstimate(
        flops=2 * M * V * D,
        transcendentals=0,
        bytes_accessed=(M * D * x_isz + V * D * w_isz
                        + V * jnp.dtype(bias.dtype).itemsize + M * V * out_isz),
    )

    if grid_k == 1:
        # Fast path: full-D contraction per tile, no accumulator scratch.
        kernel = _proj_kernel_single_k
        grid = (grid_m, grid_n)
        in_specs = [
            pl.BlockSpec((tm, tk), lambda i, j: (i, 0)),   # x
            pl.BlockSpec((tk, tn), lambda i, j: (0, j)),   # weight (D, V)
            pl.BlockSpec((1, tn), lambda i, j: (0, j)),    # bias
        ]
        out_specs = pl.BlockSpec((tm, tn), lambda i, j: (i, j))
        scratch_shapes = []
        dim_sem = ("parallel", "parallel")
    else:
        kernel = _proj_kernel_multi_k
        grid = (grid_m, grid_n, grid_k)
        in_specs = [
            pl.BlockSpec((tm, tk), lambda i, j, k: (i, k)),   # x
            pl.BlockSpec((tk, tn), lambda i, j, k: (k, j)),   # weight (D, V)
            pl.BlockSpec((1, tn), lambda i, j, k: (0, j)),    # bias
        ]
        out_specs = pl.BlockSpec((tm, tn), lambda i, j, k: (i, j))
        scratch_shapes = [pltpu.VMEM((tm, tn), jnp.float32)]
        dim_sem = ("parallel", "parallel", "arbitrary")

    out2 = pl.pallas_call(
        kernel,
        out_shape=jax.ShapeDtypeStruct((M_pad, V_pad), out_dtype),
        grid_spec=pltpu.PrefetchScalarGridSpec(
            num_scalar_prefetch=0,
            grid=grid,
            in_specs=in_specs,
            out_specs=out_specs,
            scratch_shapes=scratch_shapes,
        ),
        compiler_params=pltpu.CompilerParams(
            dimension_semantics=dim_sem,
            vmem_limit_bytes=vmem_limit,
        ),
        cost_estimate=cost,
    )(x2, w_t, b2)

    out2 = out2[:M, :V]
    return out2.reshape(*lead, V)


# ---------------------------------- main --------------------------------------

if __name__ == "__main__":
    # Small shapes consistent with the module: batch=2, seq=8, d_model=32,
    # vocab_size=1024 (lane-dense vocab axis).
    B, S, D, V = 2, 8, 32, 1024

    key = jax.random.PRNGKey(0)
    kx, kw, kb = jax.random.split(key, 3)

    x = jax.random.normal(kx, (B, S, D), jnp.float32)
    weight = (0.05 * jax.random.normal(kw, (V, D))).astype(jnp.float32)  # (out, in)
    bias = (0.05 * jax.random.normal(kb, (V,))).astype(jnp.float32)

    out = projection_layer(x, weight, bias)
    out = jax.block_until_ready(out)

    # Pure-JAX reference (identical semantics to nn.Linear forward).
    ref = x @ weight.T + bias

    assert out.shape == (B, S, V)
    assert jnp.allclose(out, ref, atol=1e-4, rtol=1e-4), "kernel/reference mismatch"

    print("KERNEL_OK")
</pallas_src>

<mosaic_0001>
module attributes {stable_mosaic.version = 11 : i64} {
  func.func @_proj_kernel_single_k(%arg0: i32, %arg1: i32, %arg2: memref<16x32xf32, #tpu.memory_space<vmem>>, %arg3: memref<32x512xf32, #tpu.memory_space<vmem>>, %arg4: memref<1x512xf32, #tpu.memory_space<vmem>>, %arg5: memref<16x512xf32, #tpu.memory_space<vmem>>) attributes {dimension_semantics = [#tpu.dimension_semantics<parallel>, #tpu.dimension_semantics<parallel>], iteration_bounds = array<i64: 1, 2>, scalar_prefetch = 0 : i64, scratch_operands = 0 : i64, tpu.core_type = #tpu.core_type<tc>, window_params = [{transform_indices = @transform_0, window_bounds = array<i64: 16, 32>}, {transform_indices = @transform_1, window_bounds = array<i64: 32, 512>}, {transform_indices = @transform_2, window_bounds = array<i64: 1, 512>}, {transform_indices = @transform_3, window_bounds = array<i64: 16, 512>}]} {
    %c0 = arith.constant 0 : index
    %c0_0 = arith.constant 0 : index
    %0 = vector.load %arg2[%c0, %c0_0] : memref<16x32xf32, #tpu.memory_space<vmem>>, vector<16x32xf32>
    %c0_1 = arith.constant 0 : index
    %c0_2 = arith.constant 0 : index
    %1 = vector.load %arg3[%c0_1, %c0_2] : memref<32x512xf32, #tpu.memory_space<vmem>>, vector<32x512xf32>
    %cst = arith.constant dense<0.000000e+00> : vector<16x512xf32>
    %2 = tpu.matmul %0, %1, %cst {dimension_numbers = #tpu.dot_dimension_numbers<[1], [0], [0], [1], [0, 0, 1, 1], [], []>} : vector<16x32xf32>, vector<32x512xf32>, vector<16x512xf32> -> vector<16x512xf32>
    %c0_3 = arith.constant 0 : index
    %c0_4 = arith.constant 0 : index
    %3 = vector.load %arg4[%c0_3, %c0_4] : memref<1x512xf32, #tpu.memory_space<vmem>>, vector<1x512xf32>
    %4 = vector.broadcast %3 : vector<1x512xf32> to vector<16x512xf32>
    %5 = arith.addf %2, %4 : vector<16x512xf32>
    %c0_5 = arith.constant 0 : index
    %c0_6 = arith.constant 0 : index
    %6 = vector.load %arg5[%c0_5, %c0_6] : memref<16x512xf32, #tpu.memory_space<vmem>>, vector<16x512xf32>
    tpu.vector_store %arg5[%c0_5, %c0_6], %5 {strides = array<i32>} : memref<16x512xf32, #tpu.memory_space<vmem>>, vector<16x512xf32>,
    return
  }
  func.func @transform_0(%arg0: i32, %arg1: i32) -> (i32, i32) {
    %c0_i32 = arith.constant 0 : i32
    %c0_i32_0 = arith.constant 0 : i32
    return %arg0, %c0_i32 : i32, i32
  }
  func.func @transform_1(%arg0: i32, %arg1: i32) -> (i32, i32) {
    %c0_i32 = arith.constant 0 : i32
    %c0_i32_0 = arith.constant 0 : i32
    return %c0_i32, %arg1 : i32, i32
  }
  func.func @transform_2(%arg0: i32, %arg1: i32) -> (i32, i32) {
    %c0_i32 = arith.constant 0 : i32
    %c0_i32_0 = arith.constant 0 : i32
    return %c0_i32, %arg1 : i32, i32
  }
  func.func @transform_3(%arg0: i32, %arg1: i32) -> (i32, i32) {
    %c0_i32 = arith.constant 0 : i32
    return %arg0, %arg1 : i32, i32
  }
}

</mosaic_0001>

<bundles_post_ra>
// kernel: tpu_custom_call.1
= control target key start
LH: loop header
LB: loop body
LE: loop exit
PB: predicated region body
PF: predicated region fallthrough
CT: control target
= control target key end

     0   :  { %s1069_s0 = inlined_call_operand.hbm [shape: f32[16,32], index: 0, kind: input, shape index: {}]   ;;  %s1070_s1 = inlined_call_operand.hbm [shape: f32[32,1024], index: 1, kind: input, shape index: {}]   ;;  %s1071_s2 = inlined_call_operand.hbm [shape: f32[1,1024], index: 2, kind: input, shape index: {}]   ;;  %s1072_s3 = inlined_call_operand.hbm [shape: f32[16,1024], index: 3, kind: output, shape index: {}]  }
   0x1   :  { %1073 = sst [smem:[#allocation12_spill]] %s1069_s0 }
   0x2   :  { %1074 = sst [smem:[#allocation13_spill]] %s1070_s1 }
   0x3   :  { %8 = vsyncpa [#allocation3], 0 }
   0x4   :  { %9 = vsyncpa [#allocation6], 0 }
   0x5   :  { %11 = vsyncpa [#allocation6 + $0x1], 0 }
   0x6   :  { %12 = vsyncpa [#allocation4], 0 }
   0x7   :  { %14 = vsyncpa [#allocation4 + $0x1], 0  ;;  %s866_s12 = smov 0   ;;  %s868_s13 = smov 0  }
   0x8   :  { %s870_s14 = smov 0   ;;  %s872_s15 = smov 0  }
   0x9   :  { %s874_s16 = smov 0   ;;  %s876_s17 = smov 0  }
   0xa LB: > { %s29_s18 = sadd.s32 1, %s831_s16  ;;  %s65_s19 = sadd.s32 1, %s823_s14  ;;  %s835_s17 = sphi %s876_s17, %s20_s17   ;;  %s831_s16 = sphi %s874_s16, %s1087_s16   ;;  %s827_s15 = sphi %s872_s15, %s1086_s15   ;;  %s823_s14 = sphi %s870_s14, %s1085_s14   ;;  %s819_s13 = sphi %s868_s13, %s1084_s13   ;;  %s815_s12 = sphi %s866_s12, %s1083_s12  }
   0xb   : > { %p30_p0 = scmp.ge.s32.totalorder %s29_s18, 2  ;;  %p72_p1 = scmp.ne.s32.totalorder %s823_s14, %s819_s13 }
   0xc   : > { %p73_p2 = scmp.eq.s32.totalorder %s835_s17, 0  ;;  %p547_p3 = scmp.ge.s32.totalorder %s835_s17, 2 }
   0xd   : > { %s1089_s18 = smov (%p30_p0, %s29_s18), 0  ;;  %p599_p5 = scmp.lt.s32.totalorder %s835_s17, 2 }
   0xe   : > { %p907_p4 = por %p73_p2, %p72_p1  ;;  %s62_s21 = ssub.s32 %s831_s16, %s1089_s18 }
   0xf   : > { %s173_s22 = sand.u32 1, %s835_s17   ;;  %p63_p6 = scmp.eq.s32.totalorder %s62_s21, 0 }
  0x10   : > { %s175_s23 = sand.u32 1, %s823_s14   ;;  %s571_s24 = sshll.u32 %s831_s16, 5 }
  0x11   : > { %s918_s25 = scalar_select %p63_p6, %s823_s14, %s65_s19  }
  0x12   : > { %s548_s26 = sshll.u32 %s175_s23, 7  ;;  %s1076_s1 = sld [smem:[#allocation13_spill]] }
  0x13   : > { %s177_s4 = scalar_lea.vmem [#allocation5], %s548_s26  ;;  %p929_p7 = pnand %p599_p5, %p907_p4 }
  0x14   : > { %s185_s5 = sshll.u32 %s177_s4, 4  ;;  %s933_s7 = scalar_lea.sflag [#allocation6], %s173_s22  ;;  %s186_s5 = int_to_ptr.vmem [resolvable:$true] %s185_s5 }
  0x15   : > { %s837_s8 = smov 1024   ;;  %s838_s9 = smov 512  }
  0x16   : > { %s839_s10 = smov 32   ;;  %s939_s11 = sadd.s32 4294967295, %s835_s17  }
  0x17   : > { %s544_s19 = sadd.s32 4294967294, %s835_s17   ;;  %p78_p8 = scmp.ne.s32.totalorder %s819_s13, %s815_s12 }
  0x18   : > { %s182_s29 = scalar_lea.hbm %s1076_s1, %s571_s24  ;;  %p79_p9 = scmp.eq.s32.totalorder %s939_s11, 0 }
  0x19   : > { %s183_s30 = sshll.u32 %s182_s29, 4  ;;  %p130_p10 = scmp.eq.s32.totalorder %s939_s11, 1  ;;  %s184_s30 = int_to_ptr.hbm [resolvable:$true] %s183_s30 }
  0x1a   : > { %590 = dma.hbm_to_vmem [thread:$0]  (!%p929_p7), %s184_s30, 2048, %s186_s5, %s933_s7, %s837_s8, %s838_s9, %s839_s10  }
  0x1b   : > { %p136_p11 = scmp.eq.s32.totalorder %s544_s19, 1  ;;  %p948_p12 = por %p79_p9, %p78_p8 }
  0x1c   : > { %p545_p13 = scmp.ge.s32.totalorder %s835_s17, 1  ;;  %p956_p0 = por %p130_p10, %p72_p1 }
  0x1d   : > { %p960_p2 = por %p136_p11, %p78_p8  ;;  %p143_p4 = scmp.lt.s32.totalorder %s835_s17, 3 }
  0x1e   : > { %s1081_s0 = sld [smem:[#allocation12_spill]]  ;;  %s840_s29 = smov [#allocation2]  }
  0x1f   : > { %p968_p5 = pnand %p545_p13, %p143_p4  ;;  %s159_s30 = sshll.u32 %s840_s29, 4  ;;  %s160_s30 = int_to_ptr.vmem [resolvable:$true] %s159_s30 }
  0x20   : > { %s551_s4 = sshll.u32 %s175_s23, 2  ;;  %s552_s5 = sshll.u32 %s831_s16, 2 }
  0x21   : > { %p583_p1 = pneg %p968_p5  ;;  %s199_s8 = scalar_lea.vmem [#allocation7], %s551_s4 }
  0x22   : > { %s207_s9 = sshll.u32 %s199_s8, 4  ;;  %s203_s24 = scalar_lea.hbm %s1071_s2, %s552_s5  ;;  %s208_s9 = int_to_ptr.vmem [resolvable:$true] %s207_s9 }
  0x23   : > { %p584_p6 = pnand %p583_p1, %p79_p9  ;;  %s841_s26 = smov 128  }
  0x24   : > { %s157_s27 = sshll.u32 %s1081_s0, 4  ;;  %s842_s0 = smov 8   ;;  %s158_s27 = int_to_ptr.hbm [resolvable:$true] %s157_s27 }
  0x25   : > { %586 = dma.hbm_to_vmem [thread:$0]  (!%p584_p6), %s158_s27, 256, %s160_s30, [#allocation3], %s841_s26, %s841_s26, %s842_s0  }
  0x26   : > { %s205_s1 = sshll.u32 %s203_s24, 4  ;;  %216 = sbr.rel (%p968_p5) target bundleno = 204 (0xcc), region = 32  ;;  %s206_s1 = int_to_ptr.hbm [resolvable:$true] %s205_s1 }
  0x27   : > { %593 = dma.hbm_to_vmem [thread:$0]  (!%p929_p7), %s206_s1, 64, %s208_s9, %s933_s7  }
  0x2b   : > { %802 = dma.done.wait (%p79_p9), [#allocation3], 256  }
  0x2c   : > { %804 = vsyncadd (%p79_p9), [#allocation3], 4294967040  ;;  %s223_s23 = sand.u32 1, %s939_s11   ;;  %s993_s29 = sand.u32 1, %s819_s13  }
  0x2d   : > { %s555_s0 = sshll.u32 %s993_s29, 7  ;;  %s224_s27 = scalar_lea.sflag [#allocation6], %s223_s23 }
  0x2e   : > { %s996_s6 = scalar_lea.vmem [#allocation5], %s555_s0 }
  0x2f   : > { %806 = dma.done.wait (%p948_p12), %s224_s27, 2112  }
  0x30   : > { %808 = vsyncadd (%p948_p12), %s224_s27, 4294965184  ;;  %v287_v0 = vld [vmem:[%s996_s6 + $0x70] sm:$0xff]  ;;  %v288_v1 = vld [vmem:[%s996_s6 + $0x78] sm:$0xff]  ;;  %vm299_vm0 = vcmask 261120   ;;  %s556_s1 = sshll.u32 %s993_s29, 2  ;;  %s557_s11 = sshll.u32 %s993_s29, 6 }
  0x31   : > { %v283_v2 = vld [vmem:[%s996_s6 + $0x50] sm:$0xff]  ;;  %364 = vmatpush.msra.mxu2 %v287_v0  ;;  %387 = vmatpush.msra.mxu3 %v288_v1  ;;  %v284_v3 = vld [vmem:[%s996_s6 + $0x58] sm:$0xff]  ;;  %v285_v6 = vld [vmem:[%s996_s6 + $0x60] sm:$0xff]  ;;  %s237_s7 = scalar_lea.vmem [#allocation7], %s556_s1  ;;  %s572_s20 = sshll.u32 %s827_s15, 5 }
  0x32   : > { %v279_v4 = vld [vmem:[%s996_s6 + $0x30] sm:$0xff]  ;;  %v280_v5 = vld [vmem:[%s996_s6 + $0x38] sm:$0xff]  ;;  %v286_v7 = vld [vmem:[%s996_s6 + $0x68] sm:$0xff]  ;;  %318 = vmatpush.msra.mxu0 %v285_v6  ;;  %s265_s28 = scalar_lea.vmem [#allocation8], %s557_s11  ;;  %s421_s5 = scalar_lea.hbm %s1072_s3, %s572_s20 }
  0x33   : > { %365 = vmatpush.msra.mxu2 %v283_v2  ;;  %388 = vmatpush.msra.mxu3 %v284_v3  ;;  %v281_v8 = vld [vmem:[%s996_s6 + $0x40] sm:$0xff]  ;;  %v275_v9 = vld [vmem:[%s996_s6 + $0x10] sm:$0xff]  ;;  %v276_v10 = vld [vmem:[%s996_s6 + $0x18] sm:$0xff]  ;;  %s422_s8 = sshll.u32 %s265_s28, 4  ;;  %s424_s9 = sshll.u32 %s421_s5, 4  ;;  %s1032_s8 = int_to_ptr.vmem [resolvable:$true] %s422_s8  ;;  %s425_s9 = int_to_ptr.hbm [resolvable:$true] %s424_s9 }
  0x34   : > { %341 = vmatpush.msra.mxu1 %v286_v7  ;;  %v282_v11 = vld [vmem:[%s996_s6 + $0x48] sm:$0xff]  ;;  %v271_v12 = vld [vmem:[#allocation2] sm:$0xff]  ;;  %319 = vmatpush.msra.mxu0 %v281_v8  ;;  %v277_v13 = vld [vmem:[%s996_s6 + $0x20] sm:$0xff]  ;;  %s407_s15 = scalar_lea.sflag [#allocation4], %s993_s29  ;;  %s763_s10 = sshra.s32 %s425_s9, 4  ;;  %s764_s10 = int_to_ptr.hbm [resolvable:$true] %s763_s10 }
  0x35   : > { %366 = vmatpush.msra.mxu2 %v279_v4  ;;  %389 = vmatpush.msra.mxu3 %v280_v5  ;;  %v278_v14 = vld [vmem:[%s996_s6 + $0x28] sm:$0xff]  ;;  %v273_v15 = vld [vmem:[%s996_s6] sm:$0xff]  ;;  %v272_v17 = vld [vmem:[#allocation2 + $0x8] sm:$0xff]  ;;  %s765_s19 = scalar_lea.hbm %s764_s10, 64  ;;  %s769_s23 = scalar_lea.hbm %s1072_s3, 128 }
  0x36   : > { %342 = vmatpush.msra.mxu1 %v282_v11  ;;  %v274_v16 = vld [vmem:[%s996_s6 + $0x8] sm:$0xff]  ;;  %320 = vmatpush.msra.mxu0 %v277_v13  ;;  %v289_v18 = vld [vmem:[%s237_s7] sm:$0xf]  ;;  %p766_p7 = scmp.ne.s32.totalorder %s764_s10, %s765_s19  ;;  %p770_p10 = scmp.lt.s32.totalorder %s764_s10, %s1072_s3 }
  0x37   : > { %367 = vmatpush.msra.mxu2 %v275_v9  ;;  %390 = vmatpush.msra.mxu3 %v276_v10  ;;  %v291_v19 = vperm.slane %v289_v18, 0  ;;  %v292_v20 = vperm.slane %v289_v18, 1  ;;  %v293_v21 = vperm.slane %v289_v18, 2  ;;  %v294_v22 = vperm.slane %v289_v18, 3  ;;  %p771_p11 = scmp.lt.s32.totalorder %s769_s23, %s765_s19 }
  0x38   : > { %562 = vmatmul.msk.f32.vlgmr.msra.gmra.mxu2 %vm299_vm0, %v271_v12  ;;  %564 = vmatmul.msk.f32.vlgmr.msra.gmra.mxu3 %vm299_vm0, %v271_v12  ;;  %p767_p8 = pnand %p766_p7, %p956_p0 }
  0x39   : > { %343 = vmatpush.msra.mxu1 %v278_v14  ;;  %321 = vmatpush.msra.mxu0 %v273_v15  ;;  %p772_p12 = por %p771_p11, %p770_p10 }
  0x3a   : > { %558 = vmatmul.msk.f32.vlgmr.msra.gmra.mxu0 %vm299_vm0, %v271_v12  ;;  %p768_p9 = pneg %p767_p8 }
  0x3b   : > { %344 = vmatpush.msra.mxu1 %v274_v16 }
  0x3c   : > { %560 = vmatmul.msk.f32.vlgmr.msra.gmra.mxu1 %vm299_vm0, %v271_v12  ;;  %p773_p13 = pnand %p772_p12, %p768_p9 }
  0x40   : > { %563 = vmatmul.msk.f32.gmra.mxu2 %vm299_vm0, %v272_v17  ;;  %565 = vmatmul.msk.f32.gmra.mxu3 %vm299_vm0, %v272_v17 }
  0x42   : > { %559 = vmatmul.msk.f32.gmra.mxu0 %vm299_vm0, %v272_v17 }
  0x44   : > { %561 = vmatmul.msk.f32.gmra.mxu1 %vm299_vm0, %v272_v17 }
  0xb7   : > { %v323_v23 = vpop.f32.mrf.mxu0 }
  0xb8   : > { %v324_v25 = vadd.f32 %v323_v23, %v291_v19 }
  0xb9   : > { %v346_v24 = vpop.f32.mrf.mxu1 }
  0xba   : > { %v347_v26 = vadd.f32 %v346_v24, %v292_v20  ;;  %398 = vst [vmem:[%s265_s28] sm:$0xff] %v324_v25 }
  0xbb   : > { %v369_v27 = vpop.f32.mrf.mxu2  ;;  %v392_v28 = vpop.f32.mrf.mxu3 }
  0xbc   : > { %v370_v29 = vadd.f32 %v369_v27, %v293_v21  ;;  %v393_v30 = vadd.f32 %v392_v28, %v294_v22  ;;  %399 = vst [vmem:[%s265_s28 + $0x8] sm:$0xff] %v347_v26 }
  0xbe   : > { %400 = vst [vmem:[%s265_s28 + $0x10] sm:$0xff] %v370_v29 }
  0xbf   : > { %401 = vst [vmem:[%s265_s28 + $0x18] sm:$0xff] %v393_v30  ;;  %v326_v31 = vpop.f32.mrf.mxu0 }
  0xc0   : > { %v327_v33 = vadd.f32 %v326_v31, %v291_v19 }
  0xc1   : > { %v349_v32 = vpop.f32.mrf.mxu1 }
  0xc2   : > { %v350_v34 = vadd.f32 %v349_v32, %v292_v20  ;;  %402 = vst [vmem:[%s265_s28 + $0x20] sm:$0xff] %v327_v33 }
  0xc3   : > { %v372_v35 = vpop.f32.mrf.mxu2  ;;  %v395_v36 = vpop.f32.mrf.mxu3 }
  0xc4   : > { %v373_v37 = vadd.f32 %v372_v35, %v293_v21  ;;  %v396_v38 = vadd.f32 %v395_v36, %v294_v22  ;;  %403 = vst [vmem:[%s265_s28 + $0x28] sm:$0xff] %v350_v34 }
  0xc6   : > { %404 = vst [vmem:[%s265_s28 + $0x30] sm:$0xff] %v373_v37 }
  0xc7   : > { %405 = vst [vmem:[%s265_s28 + $0x38] sm:$0xff] %v396_v38 }
  0xc8   : > { %776 = shalt.err (!%p773_p13)
}
  0xc9   : > { %s843_s29 = smov 512   ;;  %s844_s6 = smov 1024  }
  0xca   : > { %s845_s1 = smov 32  }
  0xcb   : > { %581 = dma.vmem_to_hbm [thread:$0]  (%p956_p0), %s1032_s8, 1024, %s425_s9, %s407_s15, %s843_s29, %s844_s6, %s845_s1  }
  0xcc PF: > { %s439_s7 = sand.u32 1, %s815_s12   ;;  %p595_p4 = pnand %p547_p3, %p960_p2 }
  0xcd   : > { %s440_s11 = scalar_lea.sflag [#allocation4], %s439_s7 }
  0xce   : > { %p596_p5 = pneg %p595_p4 }
  0xd0   : > { %810 = dma.done.wait (%p596_p5), %s440_s11, 1024  }
  0xd1   : > { %812 = vsyncadd (%p596_p5), %s440_s11, 4294966272  ;;  %s20_s17 = sadd.s32 1, %s835_s17   ;;  %s1083_s12 = smov %s819_s13 }
  0xd2   : > { %p17_p1 = scmp.ge.s32.totalorder %s20_s17, 4   ;;  %s1084_s13 = smov %s823_s14 }
  0xd3   : > { %s1085_s14 = smov %s918_s25  ;;  %s1086_s15 = smov %s831_s16 }
  0xd4   : > { %s1087_s16 = smov %s1089_s18  ;;  %19 = sbr.rel (!%p17_p1) target bundleno = 10 (0xa), region = 94 }
  0xd9   :  { %446 = vsyncpa [#allocation3], 1 }
  0xda   :  { %448 = vsyncpa [#allocation3 + $0x1], 1 }
  0xdb   :  { %449 = vsyncpa [#allocation6], 1 }
  0xdc   :  { %451 = vsyncpa [#allocation6 + $0x1], 1 }
  0xdd   :  { %452 = vsyncpa [#allocation4], 1 }
  0xde   :  { %454 = vsyncpa [#allocation4 + $0x1], 1 }

</bundles_post_ra>
